<compile_context>
chip_gen: v7x
topology: tpu7x:2x2x1
jax: 0.10.0
libtpu: 0.0.40
codegen_flags: <defaults>
</compile_context>

<pallas_src>
import functools

import jax
import jax.numpy as jnp
from jax.experimental import pallas as pl
from jax.experimental.pallas import tpu as pltpu


def _round_up(x, m):
    return (x + m - 1) // m * m


# --------------------------------------------------------------------------------------
# Kernel 1: fused projections  kqvs = x @ Wcat + bcat,  Wcat = [Wk | Wq | Wv | Wskip]
# --------------------------------------------------------------------------------------
def _proj_kernel(x_ref, w_ref, b_ref, o_ref):
    o_ref[...] = (
        jnp.dot(x_ref[...], w_ref[...], preferred_element_type=jnp.float32)
        + b_ref[...]
    ).astype(o_ref.dtype)


def _project(x, w_cat, b_cat, *, tile=128):
    # NOTE: tile=256 better fills the 2x256x256 MXU on v6e/v7x; 128 kept here so the
    # demo-sized graph still exposes >=2 parallel blocks (kernel 1 is a minor cost).
    n, din = x.shape
    dcat = w_cat.shape[1]
    return pl.pallas_call(
        _proj_kernel,
        out_shape=jax.ShapeDtypeStruct((n, dcat), jnp.float32),
        grid_spec=pltpu.PrefetchScalarGridSpec(
            num_scalar_prefetch=0,
            grid=(n // tile,),
            in_specs=[
                pl.BlockSpec((tile, din), lambda i: (i, 0)),   # x tile
                pl.BlockSpec((din, dcat), lambda i: (0, 0)),   # packed weights
                pl.BlockSpec((1, dcat), lambda i: (0, 0)),     # packed biases
            ],
            out_specs=pl.BlockSpec((tile, dcat), lambda i: (i, 0)),
        ),
        compiler_params=pltpu.CompilerParams(
            dimension_semantics=("parallel",),
            vmem_limit_bytes=32 * 1024 * 1024),
    )(x, w_cat, b_cat)


# --------------------------------------------------------------------------------------
# Kernel 2: gated aggregation
#   out[i, d] = sum_j A[i, j] * sigmoid(k[i, d] + q[j, d]) * v[j, d] + skip[i, d]
# (skip already contains x@Wskip + layer bias; nnz_ref holds per-(i,j)-block edge counts)
# --------------------------------------------------------------------------------------
def _agg_kernel(nnz_ref, k_ref, skip_ref, q_ref, v_ref, at_ref, o_ref,
                *, src_chunk, gate_dtype):
    i = pl.program_id(0)
    j = pl.program_id(1)

    # Output tile is resident across the src (j) axis: init once, accumulate in place.
    @pl.when(j == 0)
    def _():
        o_ref[...] = skip_ref[...]

    # Block-level sparsity skip: all-zero adjacency tiles do no gate work at all.
    @pl.when(nnz_ref[i, j] > 0)
    def _():
        k = k_ref[...].astype(gate_dtype)                      # [TI, D] (dst nodes)
        num_chunks = q_ref.shape[0] // src_chunk               # static, small
        acc = jnp.zeros(o_ref.shape, jnp.float32)
        # Statically unrolled chunk loop -> scheduler sees across chunks.
        for c in range(num_chunks):
            s = c * src_chunk
            q_c = q_ref[pl.ds(s, src_chunk), :].astype(gate_dtype)   # [C, D] (src)
            v_c = v_ref[pl.ds(s, src_chunk), :].astype(gate_dtype)   # [C, D]
            a_c = at_ref[pl.ds(s, src_chunk), :].astype(gate_dtype)  # [C, TI] A^T rows
            # Gating cube kept small: [C, TI, D] in gate_dtype (bf16: ~1 MiB at 32x128x128).
            gate = jax.nn.sigmoid(q_c[:, None, :] + k[None, :, :])   # [C, TI, D]
            msg = gate * (a_c[:, :, None] * v_c[:, None, :])         # [C, TI, D]
            # Reduce over the leading (non-layout) axis, accumulate in f32.
            acc = acc + jnp.sum(msg, axis=0, dtype=jnp.float32)      # [TI, D]
        o_ref[...] += acc


# --------------------------------------------------------------------------------------
# Wrapper
# --------------------------------------------------------------------------------------
def gated_gcn_forward(x, edge_index, params, *, tile_i=128, tile_j=128, src_chunk=32,
                      gate_dtype=jnp.bfloat16):
    """x: [N, Din] fp32, edge_index: [2, E] int32 (row 0 = src j, row 1 = dst i).

    gate_dtype: bf16 recommended on v6e/v7x (native bf16 VPU/EUP); use jnp.float32 on v5e.
    """
    assert tile_i % 128 == 0 and tile_j % 8 == 0
    assert tile_j % src_chunk == 0 and src_chunk % 8 == 0

    n, din = x.shape
    dout = params["wk"].shape[1]

    n_p = _round_up(n, max(tile_i, tile_j))
    assert n_p % tile_i == 0 and n_p % tile_j == 0
    din_p = _round_up(din, 128)
    dout_p = _round_up(dout, 128)

    # ---- glue: pad + pack (layout only, no per-edge compute) ----
    x_p = jnp.zeros((n_p, din_p), jnp.float32).at[:n, :din].set(x)

    def pad_w(w):
        return jnp.zeros((din_p, dout_p), jnp.float32).at[:din, :dout].set(w)

    def pad_b(b):
        return jnp.zeros((1, dout_p), jnp.float32).at[:, :dout].set(b)

    # Packed [k | q | v | skip]; the layer bias rides in the skip column's bias slot.
    w_cat = jnp.concatenate(
        [pad_w(params["wk"]), pad_w(params["wq"]),
         pad_w(params["wv"]), pad_w(params["ws"])], axis=1)       # [Din_p, 4*Dout_p]
    b_cat = jnp.concatenate(
        [pad_b(params["bk"]), pad_b(params["bq"]),
         pad_b(params["bv"]), pad_b(params["bias"])], axis=1)     # [1, 4*Dout_p]

    # Dense transposed adjacency with multiplicities: A_T[src, dst].
    # Built in f32 (scatter-add), stored bf16 (exact for small integer multiplicities).
    # Padded rows/cols are zero, so padded nodes contribute nothing.
    src, dst = edge_index[0], edge_index[1]
    a_t = jnp.zeros((n_p, n_p), jnp.float32).at[src, dst].add(1.0).astype(jnp.bfloat16)

    # Per-(dst tile, src tile) edge counts for block-level sparsity skipping.
    n_i, n_j = n_p // tile_i, n_p // tile_j
    nnz_blocks = jnp.zeros((n_i, n_j), jnp.int32).at[dst // tile_i, src // tile_j].add(1)

    # ---- Kernel 1: all projections in one fused MXU matmul ----
    kqvs = _project(x_p, w_cat, b_cat, tile=tile_i)               # [N_p, 4*Dout_p] f32

    # ---- Kernel 2: gated aggregation over (dst tile) x (src tile) ----
    kernel = functools.partial(_agg_kernel, src_chunk=src_chunk, gate_dtype=gate_dtype)
    grid = (n_i, n_j)

    out_p = pl.pallas_call(
        kernel,
        out_shape=jax.ShapeDtypeStruct((n_p, dout_p), jnp.float32),
        grid_spec=pltpu.PrefetchScalarGridSpec(
            num_scalar_prefetch=1,   # nnz_blocks -> SMEM, visible to kernel + index_maps
            grid=grid,
            in_specs=[
                pl.BlockSpec((tile_i, dout_p), lambda i, j, nnz: (i, 0)),  # k    (dst)
                pl.BlockSpec((tile_i, dout_p), lambda i, j, nnz: (i, 3)),  # skip (dst,+bias)
                pl.BlockSpec((tile_j, dout_p), lambda i, j, nnz: (j, 1)),  # q    (src)
                pl.BlockSpec((tile_j, dout_p), lambda i, j, nnz: (j, 2)),  # v    (src)
                pl.BlockSpec((tile_j, tile_i), lambda i, j, nnz: (j, i)),  # A^T  tile (bf16)
            ],
            out_specs=pl.BlockSpec((tile_i, dout_p), lambda i, j, nnz: (i, 0)),
        ),
        compiler_params=pltpu.CompilerParams(
            dimension_semantics=("parallel", "arbitrary"),
            vmem_limit_bytes=32 * 1024 * 1024),   # explicit budget (v7x: 64 MiB physical)
    )(nnz_blocks, kqvs, kqvs, kqvs, kqvs, a_t)

    return out_p[:n, :dout]


# --------------------------------------------------------------------------------------
# Pure-JAX reference matching PyG ResGatedGraphConv semantics
# --------------------------------------------------------------------------------------
def ref_forward(x, edge_index, p):
    hp = jax.lax.Precision.HIGHEST
    k = jnp.dot(x, p["wk"], precision=hp) + p["bk"][0]
    q = jnp.dot(x, p["wq"], precision=hp) + p["bq"][0]
    v = jnp.dot(x, p["wv"], precision=hp) + p["bv"][0]
    src, dst = edge_index[0], edge_index[1]     # edge j -> i
    msg = jax.nn.sigmoid(k[dst] + q[src]) * v[src]
    agg = jnp.zeros((x.shape[0], p["wk"].shape[1]), jnp.float32).at[dst].add(msg)
    return agg + jnp.dot(x, p["ws"], precision=hp) + p["bias"][0]


if __name__ == "__main__":
    N, DIN, DOUT, E = 200, 64, 96, 800   # nodes, dim_in, dim_out, num edges (non-tile-multiples)

    key = jax.random.PRNGKey(0)
    ks = jax.random.split(key, 12)

    x = jax.random.normal(ks[0], (N, DIN), dtype=jnp.float32)
    src = jax.random.randint(ks[1], (E,), 0, N)
    dst = jax.random.randint(ks[2], (E,), 0, N)
    edge_index = jnp.stack([src, dst])  # [2, E]: row 0 = source, row 1 = target

    s = 0.1
    params = {
        "wk":   s * jax.random.normal(ks[3], (DIN, DOUT), jnp.float32),
        "bk":   s * jax.random.normal(ks[4], (1, DOUT), jnp.float32),
        "wq":   s * jax.random.normal(ks[5], (DIN, DOUT), jnp.float32),
        "bq":   s * jax.random.normal(ks[6], (1, DOUT), jnp.float32),
        "wv":   s * jax.random.normal(ks[7], (DIN, DOUT), jnp.float32),
        "bv":   s * jax.random.normal(ks[8], (1, DOUT), jnp.float32),
        "ws":   s * jax.random.normal(ks[9], (DIN, DOUT), jnp.float32),   # lin_skip (no bias)
        "bias": s * jax.random.normal(ks[10], (1, DOUT), jnp.float32),    # layer bias
    }

    ref = ref_forward(x, edge_index, params)

    # f32 gate path (what you'd run on v5e): bit-tight vs the f32 reference.
    out_f32 = gated_gcn_forward(x, edge_index, params, gate_dtype=jnp.float32)
    out_f32 = jax.block_until_ready(out_f32)
    assert out_f32.shape == (N, DOUT)
    err_f32 = float(jnp.max(jnp.abs(out_f32 - ref)))
    assert jnp.allclose(out_f32, ref, atol=1e-3, rtol=1e-3), \
        f"f32-gate mismatch vs JAX reference (max abs err {err_f32})"

    # bf16 gate path (default; v6e/v7x): f32 accumulation, looser tolerance.
    out_bf16 = gated_gcn_forward(x, edge_index, params, gate_dtype=jnp.bfloat16)
    out_bf16 = jax.block_until_ready(out_bf16)
    assert out_bf16.shape == (N, DOUT)
    err_bf16 = float(jnp.max(jnp.abs(out_bf16 - ref)))
    assert err_bf16 < 1e-1, f"bf16-gate mismatch vs JAX reference (max abs err {err_bf16})"

    print("KERNEL_OK")
</pallas_src>

<mosaic_0001>
module attributes {stable_mosaic.version = 11 : i64} {
  func.func @_proj_kernel(%arg0: i32, %arg1: memref<128x128xf32, #tpu.memory_space<vmem>>, %arg2: memref<128x512xf32, #tpu.memory_space<vmem>>, %arg3: memref<1x512xf32, #tpu.memory_space<vmem>>, %arg4: memref<128x512xf32, #tpu.memory_space<vmem>>) attributes {dimension_semantics = [#tpu.dimension_semantics<parallel>], iteration_bounds = array<i64: 2>, scalar_prefetch = 0 : i64, scratch_operands = 0 : i64, tpu.core_type = #tpu.core_type<tc>, window_params = [{transform_indices = @transform_0, window_bounds = array<i64: 128, 128>}, {pipeline_mode = #tpu.pipeline_mode<synchronous>, transform_indices = @transform_1, window_bounds = array<i64: 128, 512>}, {pipeline_mode = #tpu.pipeline_mode<synchronous>, transform_indices = @transform_2, window_bounds = array<i64: 1, 512>}, {transform_indices = @transform_3, window_bounds = array<i64: 128, 512>}]} {
    %c0 = arith.constant 0 : index
    %c0_0 = arith.constant 0 : index
    %0 = vector.load %arg1[%c0, %c0_0] : memref<128x128xf32, #tpu.memory_space<vmem>>, vector<128x128xf32>
    %c0_1 = arith.constant 0 : index
    %c0_2 = arith.constant 0 : index
    %1 = vector.load %arg2[%c0_1, %c0_2] : memref<128x512xf32, #tpu.memory_space<vmem>>, vector<128x512xf32>
    %cst = arith.constant dense<0.000000e+00> : vector<128x512xf32>
    %2 = tpu.matmul %0, %1, %cst {dimension_numbers = #tpu.dot_dimension_numbers<[1], [0], [0], [1], [0, 0, 1, 1], [], []>} : vector<128x128xf32>, vector<128x512xf32>, vector<128x512xf32> -> vector<128x512xf32>
    %c0_3 = arith.constant 0 : index
    %c0_4 = arith.constant 0 : index
    %3 = vector.load %arg3[%c0_3, %c0_4] : memref<1x512xf32, #tpu.memory_space<vmem>>, vector<1x512xf32>
    %4 = vector.broadcast %3 : vector<1x512xf32> to vector<128x512xf32>
    %5 = arith.addf %2, %4 : vector<128x512xf32>
    %c0_5 = arith.constant 0 : index
    %c0_6 = arith.constant 0 : index
    %6 = vector.load %arg4[%c0_5, %c0_6] : memref<128x512xf32, #tpu.memory_space<vmem>>, vector<128x512xf32>
    tpu.vector_store %arg4[%c0_5, %c0_6], %5 {strides = array<i32>} : memref<128x512xf32, #tpu.memory_space<vmem>>, vector<128x512xf32>,
    return
  }
  func.func @transform_0(%arg0: i32) -> (i32, i32) {
    %c0_i32 = arith.constant 0 : i32
    %c0_i32_0 = arith.constant 0 : i32
    return %arg0, %c0_i32 : i32, i32
  }
  func.func @transform_1(%arg0: i32) -> (i32, i32) {
    %c0_i32 = arith.constant 0 : i32
    %c0_i32_0 = arith.constant 0 : i32
    %c0_i32_1 = arith.constant 0 : i32
    return %c0_i32, %c0_i32_0 : i32, i32
  }
  func.func @transform_2(%arg0: i32) -> (i32, i32) {
    %c0_i32 = arith.constant 0 : i32
    %c0_i32_0 = arith.constant 0 : i32
    %c0_i32_1 = arith.constant 0 : i32
    return %c0_i32, %c0_i32_0 : i32, i32
  }
  func.func @transform_3(%arg0: i32) -> (i32, i32) {
    %c0_i32 = arith.constant 0 : i32
    %c0_i32_0 = arith.constant 0 : i32
    return %arg0, %c0_i32 : i32, i32
  }
}

</mosaic_0001>

<bundles_post_ra>
// kernel: tpu_custom_call.1
= control target key start
LH: loop header
LB: loop body
LE: loop exit
PB: predicated region body
PF: predicated region fallthrough
CT: control target
= control target key end

     0   :  { %8 = vsyncpa [#allocation3], 0  ;;  %s1494_s0 = inlined_call_operand.hbm [shape: f32[256,128], index: 0, kind: input, shape index: {}]   ;;  %s1495_s1 = inlined_call_operand.hbm [shape: f32[128,512], index: 1, kind: input, shape index: {}]   ;;  %s1496_s2 = inlined_call_operand.vmem [shape: f32[1,512], index: 2, kind: input, shape index: {}]   ;;  %s1497_s3 = inlined_call_operand.hbm [shape: f32[256,512], index: 3, kind: output, shape index: {}]  }
   0x1   :  { %10 = vsyncpa [#allocation3 + $0x1], 0 }
   0x2   :  { %11 = vsyncpa [#allocation6], 0 }
   0x3   :  { %12 = vsyncpa [#allocation4], 0 }
   0x4   :  { %14 = vsyncpa [#allocation4 + $0x1], 0  ;;  %s1100_s12 = smov 0   ;;  %s1102_s13 = smov 0  }
   0x5   :  { %s1104_s14 = smov 0   ;;  %s1106_s15 = smov 0  }
   0x6 LB: > { %s1121_s16 = sadd.s32 4294967295, %s1068_s15   ;;  %s792_s17 = sadd.s32 4294967294, %s1068_s15   ;;  %s1068_s15 = sphi %s1106_s15, %s1517_s15   ;;  %s1064_s14 = sphi %s1104_s14, %s1516_s14   ;;  %s1060_s13 = sphi %s1102_s13, %s1515_s13   ;;  %s1056_s12 = sphi %s1100_s12, %s1514_s12  }
   0x7   : > { %p40_p0 = scmp.ne.s32.totalorder %s1060_s13, %s1056_s12  ;;  %p1498_p1 = scmp.eq.s32.totalorder %s1121_s16, 0 }
   0x8   : > { %p112_p3 = scmp.eq.s32.totalorder %s792_s17, 1  ;;  %p793_p5 = scmp.ge.s32.totalorder %s1068_s15, 1 }
   0x9   : > { %p1130_p4 = por %p1498_p1, %p40_p0  ;;  %p119_p7 = scmp.lt.s32.totalorder %s1068_s15, 3 }
   0xa   : > { %p1135_p6 = por %p112_p3, %p40_p0  ;;  %s1070_s21 = smov [#allocation5]  }
   0xb   : > { %s1501_s18 = scalar_select %p1130_p4, 1, 0 }
   0xc   : > { %s1502_s19 = scalar_select %p1135_p6, 1, 0 }
   0xd   : > { %p1140_p8 = pnand %p793_p5, %p119_p7  ;;  %s131_s22 = sshll.u32 %s1070_s21, 4  ;;  %s1144_s22 = int_to_ptr.vmem [resolvable:$true] %s131_s22 }
   0xe   : > { %s1156_s24 = sadd.s32 1, %s1068_s15   ;;  %s27_s25 = sadd.s32 1, %s1064_s14 }
   0xf   : > { %s1503_s20 = scalar_select %p1140_p8, 1, 0 }
  0x10   : > { %p884_p9 = pneg %p1140_p8  ;;  %s24_s26 = ssub.s32 %s1068_s15, %s1156_s24 }
  0x11   : > { %s940_s29 = scalar_lea.hbm %s1495_s1, 8192 }
  0x12   : > { %p1151_p11 = pnand %p884_p9, %p1498_p1  ;;  %p941_p12 = scmp.ne.s32.totalorder %s1495_s1, %s940_s29 }
  0x13   : > { %p947_p5 = scmp.lt.u32.totalorder %s940_s29, %s1495_s1 }
  0x14   : > { %p942_p13 = pneg %p1151_p11 }
  0x16   : > { %p943_p0 = pnand %p942_p13, %p941_p12 }
  0x18   : > { %p944_p3 = pneg %p943_p0 }
  0x1a   : > { %p949_p7 = pnand %p947_p5, %p944_p3 }
  0x1c   : > { %952 = shalt.err (!%p949_p7)
}
  0x1d   : > { %s953_s7 = scalar_lea.vmem %s1144_s22, 8192  ;;  %p961_p2 = scmp.lt.s32.totalorder %s1144_s22, %s1144_s22 }
  0x1e   : > { %p954_p9 = scmp.ne.s32.totalorder %s1144_s22, %s953_s7  ;;  %p962_p6 = scmp.lt.s32.totalorder %s953_s7, %s953_s7 }
  0x20   : > { %p956_p10 = pnand %p954_p9, %p942_p13  ;;  %p963_p4 = por %p962_p6, %p961_p2 }
  0x22   : > { %p957_p1 = pneg %p956_p10 }
  0x24   : > { %p964_p8 = pnand %p963_p4, %p957_p1 }
  0x26   : > { %967 = shalt.err (!%p964_p8)
}
  0x27   : > { %s1071_s8 = smov 512   ;;  %s1072_s9 = smov 32  }
  0x28   : > { %887 = dma.hbm_to_vmem [thread:$0]  (!%p1151_p11), %s1495_s1, 8192, %s1144_s22, [#allocation6], %s1071_s8, %s1071_s8, %s1072_s9  }
  0x29   : > { %p25_p2 = scmp.eq.s32.totalorder %s24_s26, 0  ;;  %p34_p1 = scmp.ne.s32.totalorder %s1064_s14, %s1060_s13 }
  0x2a   : > { %p35_p4 = scmp.eq.s32.totalorder %s1068_s15, 0  ;;  %p897_p6 = scmp.lt.s32.totalorder %s1068_s15, 2 }
  0x2b   : > { %s1187_s17 = scalar_select %p25_p2, %s1064_s14, %s27_s25  }
  0x2c   : > { %p36_p8 = por %p35_p4, %p34_p1  ;;  %p1505_p10 = scmp.eq.s32.totalorder %s1121_s16, 1 }
  0x2d   : > { %s148_s27 = sand.u32 1, %s1064_s14   ;;  %s809_s28 = sshll.u32 %s1068_s15, 11 }
  0x2e   : > { %p1191_p12 = por %p1505_p10, %p34_p1  ;;  %s796_s29 = sshll.u32 %s148_s27, 7 }
  0x2f   : > { %s1200_s4 = scalar_lea.hbm %s1494_s0, %s809_s28  ;;  %s152_s22 = scalar_lea.vmem [#allocation2], %s796_s29 }
  0x30   : > { %s159_s25 = sshll.u32 %s152_s22, 4  ;;  %p1202_p11 = pnand %p897_p6, %p36_p8  ;;  %s1206_s25 = int_to_ptr.vmem [resolvable:$true] %s159_s25 }
  0x31   : > { %s1208_s5 = scalar_lea.sflag [#allocation3], %s148_s27  ;;  %s968_s6 = scalar_lea.hbm %s1200_s4, 2048 }
  0x32   : > { %p969_p13 = scmp.ne.s32.totalorder %s1200_s4, %s968_s6  ;;  %p970_p0 = pneg %p1202_p11 }
  0x33   : > { %s973_s9 = scalar_lea.hbm %s1494_s0, 4096  ;;  %p974_p7 = scmp.lt.u32.totalorder %s1200_s4, %s1494_s0 }
  0x34   : > { %p971_p3 = pnand %p970_p0, %p969_p13  ;;  %p975_p9 = scmp.lt.u32.totalorder %s973_s9, %s968_s6 }
  0x35   : > { %p977_p1 = scmp.lt.u32.totalorder %s968_s6, %s1200_s4 }
  0x36   : > { %p972_p5 = pneg %p971_p3  ;;  %p976_p2 = por %p975_p9, %p974_p7 }
  0x38   : > { %p978_p4 = por %p977_p1, %p976_p2 }
  0x3a   : > { %p979_p6 = pnand %p978_p4, %p972_p5 }
  0x3c   : > { %982 = shalt.err (!%p979_p6)
}
  0x3d   : > { %s983_s27 = scalar_lea.vmem %s1206_s25, 2048  ;;  %s1073_s28 = smov [#allocation2]  }
  0x3e   : > { %p984_p8 = scmp.ne.s32.totalorder %s1206_s25, %s983_s27  ;;  %s988_s29 = sshll.u32 %s1073_s28, 4  ;;  %s989_s29 = int_to_ptr.vmem [resolvable:$false] %s988_s29 }
  0x3f   : > { %s990_s23 = scalar_lea.vmem %s989_s29, 4096  ;;  %p991_p3 = scmp.lt.s32.totalorder %s1206_s25, %s989_s29 }
  0x40   : > { %p986_p10 = pnand %p984_p8, %p970_p0  ;;  %p992_p7 = scmp.lt.s32.totalorder %s990_s23, %s983_s27 }
  0x42   : > { %p987_p13 = pneg %p986_p10  ;;  %p993_p9 = por %p992_p7, %p991_p3 }
  0x44   : > { %p994_p2 = pnand %p993_p9, %p987_p13 }
  0x46   : > { %997 = shalt.err (!%p994_p2)
}
  0x47   : > { %s1074_s30 = smov 128   ;;  %s1075_s22 = smov 8  }
  0x48   : > { %891 = dma.hbm_to_vmem [thread:$0]  (!%p1202_p11), %s1200_s4, 2048, %s1206_s25, %s1208_s5, %s1074_s30, %s1074_s30, %s1075_s22  }
  0x49   : > { %p1508_p0 = scmp.ne.s32.totalorder %s1503_s20, 0 }
  0x4a   : > { %s1239_s6 = sand.u32 (!%p1508_p0), 1, %s1060_s13   ;;  %p1509_p5 = scmp.ne.s32.totalorder (!%p1508_p0), %s1501_s18, 0 }
  0x4b   : > { %171 = sbr.rel (%p1508_p0) target bundleno = 413 (0x19d), region = 32  ;;  %s800_s7 = sshll.u32 (!%p1508_p0), %s1239_s6, 7 }
  0x4c   : > { %s174_s8 = scalar_lea.sflag (!%p1508_p0), [#allocation3], %s1239_s6  ;;  %s1243_s9 = scalar_lea.vmem (!%p1508_p0), [#allocation2], %s800_s7 }
  0x52   : > { %1043 = dma.done.wait (%p1509_p5), %s174_s8, 2048  }
  0x53   : > { %1045 = vsyncadd (%p1509_p5), %s174_s8, 4294965248  ;;  %p1510_p11 = scmp.eq.s32.totalorder %s1121_s16, 0 }
  0x55   : > { %1047 = dma.done.wait (%p1510_p11), [#allocation6], 8192   ;;  %p1511_p1 = pmov %p1510_p11 }
  0x56   : > { %v1076_v0 = vmov 0.0   ;;  %v223_v1 = vld [vmem:[#allocation5 + $0x8] sm:$0xff]  ;;  %v225_v3 = vld [vmem:[#allocation5 + $0x18] sm:$0xff]  ;;  %v222_v6 = vld [vmem:[#allocation5] sm:$0xff]  ;;  %s802_s4 = sshll.u32 %s1239_s6, 9  ;;  %s811_s26 = sshll.u32 %s1121_s16, 13 }
  0x57   : > { %1049 = vsyncadd (%p1511_p1), [#allocation6], 4294959104  ;;  %372 = vmatprep.mubr.f32.mxu0 %v1076_v0  ;;  %533 = vmatprep.mubr.f32.mxu1 %v1076_v0  ;;  %v227_v2 = vld [vmem:[#allocation5 + $0x28] sm:$0xff]  ;;  %v229_v5 = vld [vmem:[#allocation5 + $0x38] sm:$0xff]  ;;  %s1316_s25 = scalar_lea.vmem [#allocation7], %s802_s4  ;;  %s1443_s11 = scalar_lea.hbm %s1497_s3, %s811_s26 }
  0x58   : > { %v812_v4 = vpack.c.bf16 %v227_v2, %v223_v1  ;;  %v226_v7 = vld [vmem:[#allocation5 + $0x20] sm:$0xff]  ;;  %v844_v8 = vpack.c.bf16 %v229_v5, %v225_v3  ;;  %v224_v10 = vld [vmem:[#allocation5 + $0x10] sm:$0xff]  ;;  %v231_v12 = vld [vmem:[#allocation5 + $0x48] sm:$0xff]  ;;  %s709_s5 = sshll.u32 %s1316_s25, 4  ;;  %s695_s27 = scalar_lea.sflag [#allocation4], %s1239_s6  ;;  %s1445_s5 = int_to_ptr.vmem [resolvable:$true] %s709_s5 }
  0x59   : > { %v814_v9 = vpack.c.bf16 %v226_v7, %v222_v6  ;;  %v228_v11 = vld [vmem:[#allocation5 + $0x30] sm:$0xff]  ;;  %v235_v14 = vld [vmem:[#allocation5 + $0x68] sm:$0xff]  ;;  %v233_v15 = vld [vmem:[#allocation5 + $0x58] sm:$0xff]  ;;  %s998_s28 = scalar_lea.vmem %s1445_s5, 8192  ;;  %s1077_s29 = smov [#allocation7]  }
  0x5a   : > { %813 = vmatprep.subr.bf16.mxu0 %v812_v4  ;;  %v846_v13 = vpack.c.bf16 %v228_v11, %v224_v10  ;;  %v237_v16 = vld [vmem:[#allocation5 + $0x78] sm:$0xff]  ;;  %845 = vmatprep.subr.bf16.mxu1 %v844_v8  ;;  %v816_v17 = vpack.c.bf16 %v235_v14, %v231_v12  ;;  %v230_v19 = vld [vmem:[#allocation5 + $0x40] sm:$0xff]  ;;  %v232_v21 = vld [vmem:[#allocation5 + $0x50] sm:$0xff]  ;;  %p999_p4 = scmp.ne.s32.totalorder %s1445_s5, %s998_s28  ;;  %s1002_s23 = sshll.u32 %s1077_s29, 4  ;;  %s1003_s23 = int_to_ptr.vmem [resolvable:$false] %s1002_s23 }
  0x5b   : > { %815 = vmatpush1.bf16.msra.mxu0 %v814_v9  ;;  %v848_v18 = vpack.c.bf16 %v237_v16, %v233_v15  ;;  %v234_v20 = vld [vmem:[#allocation5 + $0x60] sm:$0xff]  ;;  %v236_v23 = vld [vmem:[#allocation5 + $0x70] sm:$0xff]  ;;  %v239_v24 = vld [vmem:[#allocation5 + $0x88] sm:$0xff]  ;;  %s1004_s30 = scalar_lea.vmem %s1003_s23, 16384  ;;  %p1005_p10 = scmp.lt.s32.totalorder %s1445_s5, %s1003_s23 }
  0x5c   : > { %847 = vmatpush1.bf16.msra.mxu1 %v846_v13  ;;  %v818_v22 = vpack.c.bf16 %v234_v20, %v230_v19  ;;  %v243_v25 = vld [vmem:[#allocation5 + $0xa8] sm:$0xff]  ;;  %817 = vmatprep.subr.bf16.mxu0 %v816_v17  ;;  %v850_v26 = vpack.c.bf16 %v236_v23, %v232_v21  ;;  %v241_v28 = vld [vmem:[#allocation5 + $0x98] sm:$0xff]  ;;  %v238_v30 = vld [vmem:[#allocation5 + $0x80] sm:$0xff]  ;;  %p1000_p6 = pnand %p999_p4, %p1191_p12  ;;  %p1006_p13 = scmp.lt.s32.totalorder %s1004_s30, %s998_s28 }
  0x5d   : > { %849 = vmatprep.subr.bf16.mxu1 %v848_v18  ;;  %v820_v27 = vpack.c.bf16 %v243_v25, %v239_v24  ;;  %v245_v29 = vld [vmem:[#allocation5 + $0xb8] sm:$0xff]  ;;  %v242_v32 = vld [vmem:[#allocation5 + $0xa0] sm:$0xff]  ;;  %v240_v33 = vld [vmem:[#allocation5 + $0x90] sm:$0xff] }
  0x5e   : > { %v852_v31 = vpack.c.bf16 %v245_v29, %v241_v28  ;;  %v244_v34 = vld [vmem:[#allocation5 + $0xb0] sm:$0xff]  ;;  %v822_v35 = vpack.c.bf16 %v242_v32, %v238_v30  ;;  %v247_v36 = vld [vmem:[#allocation5 + $0xc8] sm:$0xff]  ;;  %v249_v38 = vld [vmem:[#allocation5 + $0xd8] sm:$0xff]  ;;  %p1001_p8 = pneg %p1000_p6  ;;  %p1007_p3 = por %p1006_p13, %p1005_p10 }
  0x5f   : > { %819 = vmatpush1.bf16.msra.mxu0 %v818_v22  ;;  %v251_v37 = vld [vmem:[#allocation5 + $0xe8] sm:$0xff]  ;;  %v854_v39 = vpack.c.bf16 %v244_v34, %v240_v33  ;;  %v253_v41 = vld [vmem:[#allocation5 + $0xf8] sm:$0xff]  ;;  %v246_v42 = vld [vmem:[#allocation5 + $0xc0] sm:$0xff] }
  0x60   : > { %851 = vmatpush1.bf16.msra.mxu1 %v850_v26  ;;  %821 = vmatprep.subr.bf16.mxu0 %v820_v27  ;;  %v824_v40 = vpack.c.bf16 %v251_v37, %v247_v36  ;;  %v250_v43 = vld [vmem:[#allocation5 + $0xe0] sm:$0xff]  ;;  %v856_v44 = vpack.c.bf16 %v253_v41, %v249_v38  ;;  %v248_v45 = vld [vmem:[#allocation5 + $0xd0] sm:$0xff]  ;;  %v255_v47 = vld [vmem:[#allocation5 + $0x108] sm:$0xff]  ;;  %p1008_p7 = pnand %p1007_p3, %p1001_p8 }
  0x61   : > { %853 = vmatprep.subr.bf16.mxu1 %v852_v31  ;;  %v252_v46 = vld [vmem:[#allocation5 + $0xf0] sm:$0xff]  ;;  %v259_v48 = vld [vmem:[#allocation5 + $0x128] sm:$0xff]  ;;  %v257_v49 = vld [vmem:[#allocation5 + $0x118] sm:$0xff]  ;;  %v826_v51 = vpack.c.bf16 %v250_v43, %v246_v42 }
  0x62   : > { %v261_v50 = vld [vmem:[#allocation5 + $0x138] sm:$0xff]  ;;  %v858_v52 = vpack.c.bf16 %v252_v46, %v248_v45  ;;  %v828_v53 = vpack.c.bf16 %v259_v48, %v255_v47  ;;  %v254_v54 = vld [vmem:[#allocation5 + $0x100] sm:$0xff]  ;;  %v256_v56 = vld [vmem:[#allocation5 + $0x110] sm:$0xff] }
  0x63   : > { %823 = vmatpush1.bf16.msra.mxu0 %v822_v35  ;;  %v258_v55 = vld [vmem:[#allocation5 + $0x120] sm:$0xff]  ;;  %v860_v57 = vpack.c.bf16 %v261_v50, %v257_v49  ;;  %v260_v58 = vld [vmem:[#allocation5 + $0x130] sm:$0xff]  ;;  %v263_v59 = vld [vmem:[#allocation5 + $0x148] sm:$0xff]  ;;  %v288_v50 = vlaneseq }
  0x64   : > { %855 = vmatpush1.bf16.msra.mxu1 %v854_v39  ;;  %825 = vmatprep.subr.bf16.mxu0 %v824_v40  ;;  %v267_v60 = vld [vmem:[#allocation5 + $0x168] sm:$0xff]  ;;  %v265_v61 = vld [vmem:[#allocation5 + $0x158] sm:$0xff]  ;;  %v830_v63 = vpack.c.bf16 %v258_v55, %v254_v54  ;;  %v862_v1 = vpack.c.bf16 %v260_v58, %v256_v56  ;;  %v262_v3 = vld [vmem:[#allocation5 + $0x140] sm:$0xff] }
  0x65   : > { %857 = vmatprep.subr.bf16.mxu1 %v856_v44  ;;  %v269_v62 = vld [vmem:[#allocation5 + $0x178] sm:$0xff]  ;;  %v832_v2 = vpack.c.bf16 %v267_v60, %v263_v59  ;;  %v266_v4 = vld [vmem:[#allocation5 + $0x160] sm:$0xff]  ;;  %v264_v5 = vld [vmem:[#allocation5 + $0x150] sm:$0xff] }
  0x66   : > { %v864_v6 = vpack.c.bf16 %v269_v62, %v265_v61  ;;  %v268_v7 = vld [vmem:[#allocation5 + $0x170] sm:$0xff]  ;;  %v271_v8 = vld [vmem:[#allocation5 + $0x188] sm:$0xff]  ;;  %v273_v10 = vld [vmem:[#allocation5 + $0x198] sm:$0xff]  ;;  %v834_v12 = vpack.c.bf16 %v266_v4, %v262_v3 }
  0x67   : > { %827 = vmatpush1.bf16.msra.mxu0 %v826_v51  ;;  %v275_v9 = vld [vmem:[#allocation5 + $0x1a8] sm:$0xff]  ;;  %v277_v11 = vld [vmem:[#allocation5 + $0x1b8] sm:$0xff]  ;;  %v866_v13 = vpack.c.bf16 %v268_v7, %v264_v5  ;;  %v270_v15 = vld [vmem:[#allocation5 + $0x180] sm:$0xff]  ;;  %v289_v51 = vshrl.u32 %v288_v50, 7 }
  0x68   : > { %859 = vmatpush1.bf16.msra.mxu1 %v858_v52  ;;  %829 = vmatprep.subr.bf16.mxu0 %v828_v53  ;;  %v836_v14 = vpack.c.bf16 %v275_v9, %v271_v8  ;;  %v274_v16 = vld [vmem:[#allocation5 + $0x1a0] sm:$0xff]  ;;  %v272_v17 = vld [vmem:[#allocation5 + $0x190] sm:$0xff]  ;;  %v868_v18 = vpack.c.bf16 %v277_v11, %v273_v10  ;;  %v279_v20 = vld [vmem:[#allocation5 + $0x1c8] sm:$0xff] }
  0x69   : > { %861 = vmatprep.subr.bf16.mxu1 %v860_v57  ;;  %v276_v19 = vld [vmem:[#allocation5 + $0x1b0] sm:$0xff]  ;;  %v283_v21 = vld [vmem:[#allocation5 + $0x1e8] sm:$0xff]  ;;  %v281_v22 = vld [vmem:[#allocation5 + $0x1d8] sm:$0xff]  ;;  %v838_v24 = vpack.c.bf16 %v274_v16, %v270_v15  ;;  %v290_v52 = vsub.s32 0, %v289_v51  ;;  %v298_v54 = vsub.s32 2, %v289_v51  ;;  %v294_v55 = vsub.s32 1, %v289_v51 }
  0x6a   : > { %v285_v23 = vld [vmem:[#allocation5 + $0x1f8] sm:$0xff]  ;;  %v870_v25 = vpack.c.bf16 %v276_v19, %v272_v17  ;;  %v840_v26 = vpack.c.bf16 %v283_v21, %v279_v20  ;;  %v278_v27 = vld [vmem:[#allocation5 + $0x1c0] sm:$0xff]  ;;  %v280_v30 = vld [vmem:[#allocation5 + $0x1d0] sm:$0xff]  ;;  %v302_v56 = vsub.s32 3, %v289_v51 }
  0x6b   : > { %831 = vmatpush1.bf16.msra.mxu0 %v830_v63  ;;  %v282_v28 = vld [vmem:[#allocation5 + $0x1e0] sm:$0xff]  ;;  %v872_v29 = vpack.c.bf16 %v285_v23, %v281_v22  ;;  %v284_v31 = vld [vmem:[#allocation5 + $0x1f0] sm:$0xff]  ;;  %v207_v35 = vld [vmem:[%s1243_s9 + $0x8] sm:$0xff] }
  0x6c   : > { %863 = vmatpush1.bf16.msra.mxu1 %v862_v1  ;;  %833 = vmatprep.subr.bf16.mxu0 %v832_v2  ;;  %v842_v32 = vpack.c.bf16 %v282_v28, %v278_v27  ;;  %v874_v33 = vpack.c.bf16 %v284_v31, %v280_v30  ;;  %v206_v34 = vld [vmem:[%s1243_s9] sm:$0xff]  ;;  %v208_v36 = vld [vmem:[%s1243_s9 + $0x10] sm:$0xff]  ;;  %v209_v37 = vld [vmem:[%s1243_s9 + $0x18] sm:$0xff] }
  0x6d   : > { %865 = vmatprep.subr.bf16.mxu1 %v864_v6  ;;  %v210_v38 = vld [vmem:[%s1243_s9 + $0x20] sm:$0xff]  ;;  %v211_v39 = vld [vmem:[%s1243_s9 + $0x28] sm:$0xff]  ;;  %v212_v40 = vld [vmem:[%s1243_s9 + $0x30] sm:$0xff] }
  0x6e   : > { %v213_v41 = vld [vmem:[%s1243_s9 + $0x38] sm:$0xff]  ;;  %v214_v42 = vld [vmem:[%s1243_s9 + $0x40] sm:$0xff]  ;;  %v215_v43 = vld [vmem:[%s1243_s9 + $0x48] sm:$0xff] }
  0x6f   : > { %835 = vmatpush1.bf16.msra.mxu0 %v834_v12  ;;  %v216_v44 = vld [vmem:[%s1243_s9 + $0x50] sm:$0xff]  ;;  %v217_v45 = vld [vmem:[%s1243_s9 + $0x58] sm:$0xff]  ;;  %v218_v46 = vld [vmem:[%s1243_s9 + $0x60] sm:$0xff] }
  0x70   : > { %867 = vmatpush1.bf16.msra.mxu1 %v866_v13  ;;  %837 = vmatprep.subr.bf16.mxu0 %v836_v14  ;;  %v219_v47 = vld [vmem:[%s1243_s9 + $0x68] sm:$0xff]  ;;  %v220_v48 = vld [vmem:[%s1243_s9 + $0x70] sm:$0xff]  ;;  %v221_v49 = vld [vmem:[%s1243_s9 + $0x78] sm:$0xff] }
  0x71   : > { %869 = vmatprep.subr.bf16.mxu1 %v868_v18  ;;  %v286_v53 = vld [vmem:[%s1496_s2] sm:$0xf] }
  0x72   : > { %v1305_v57 = vrot.slane %v286_v53, %v290_v52  ;;  %v1307_v58 = vrot.slane %v286_v53, %v298_v54  ;;  %v1309_v59 = vrot.slane %v286_v53, %v294_v55 }
  0x73   : > { %839 = vmatpush1.bf16.msra.mxu0 %v838_v24 }
  0x74   : > { %871 = vmatpush1.bf16.msra.mxu1 %v870_v25  ;;  %841 = vmatprep.subr.bf16.mxu0 %v840_v26 }
  0x75   : > { %873 = vmatprep.subr.bf16.mxu1 %v872_v29 }
  0x77   : > { %843 = vmatpush1.bf16.msra.mxu0 %v842_v32 }
  0x78   : > { %875 = vmatpush1.bf16.msra.mxu1 %v874_v33 }
  0x7a   : > { %373 = vmatmul.mubr.f32.vlgmr.msra.gmra.mrb[0].mxu0 %v206_v34 }
  0x7b   : > { %534 = vmatmul.mubr.f32.vlgmr.msra.gmra.mrb[0].mxu1 %v206_v34  ;;  %378 = vmatprep.mubr.f32.mxu0 %v1076_v0 }
  0x7c   : > { %539 = vmatprep.mubr.f32.mxu1 %v1076_v0 }
  0x7e   : > { %379 = vmatmul.mubr.f32.gmra.mrb[2].mxu0 %v207_v35 }
  0x7f   : > { %540 = vmatmul.mubr.f32.gmra.mrb[2].mxu1 %v207_v35  ;;  %384 = vmatprep.mubr.f32.mxu0 %v1076_v0 }
  0x80   : > { %545 = vmatprep.mubr.f32.mxu1 %v1076_v0 }
  0x82   : > { %385 = vmatmul.mubr.f32.gmra.mrb[4].mxu0 %v208_v36 }
  0x83   : > { %546 = vmatmul.mubr.f32.gmra.mrb[4].mxu1 %v208_v36  ;;  %390 = vmatprep.mubr.f32.mxu0 %v1076_v0 }
  0x84   : > { %551 = vmatprep.mubr.f32.mxu1 %v1076_v0 }
  0x86   : > { %391 = vmatmul.mubr.f32.gmra.mrb[6].mxu0 %v209_v37 }
  0x87   : > { %552 = vmatmul.mubr.f32.gmra.mrb[6].mxu1 %v209_v37  ;;  %396 = vmatprep.mubr.f32.mxu0 %v1076_v0 }
  0x88   : > { %557 = vmatprep.mubr.f32.mxu1 %v1076_v0 }
  0x8a   : > { %397 = vmatmul.mubr.f32.gmra.mrb[8].mxu0 %v210_v38 }
  0x8b   : > { %558 = vmatmul.mubr.f32.gmra.mrb[8].mxu1 %v210_v38  ;;  %402 = vmatprep.mubr.f32.mxu0 %v1076_v0 }
  0x8c   : > { %563 = vmatprep.mubr.f32.mxu1 %v1076_v0 }
  0x8e   : > { %403 = vmatmul.mubr.f32.gmra.mrb[10].mxu0 %v211_v39 }
  0x8f   : > { %564 = vmatmul.mubr.f32.gmra.mrb[10].mxu1 %v211_v39  ;;  %408 = vmatprep.mubr.f32.mxu0 %v1076_v0 }
  0x90   : > { %569 = vmatprep.mubr.f32.mxu1 %v1076_v0 }
  0x92   : > { %409 = vmatmul.mubr.f32.gmra.mrb[12].mxu0 %v212_v40 }
  0x93   : > { %570 = vmatmul.mubr.f32.gmra.mrb[12].mxu1 %v212_v40  ;;  %414 = vmatprep.mubr.f32.mxu0 %v1076_v0 }
  0x94   : > { %575 = vmatprep.mubr.f32.mxu1 %v1076_v0 }
  0x96   : > { %415 = vmatmul.mubr.f32.gmra.mrb[14].mxu0 %v213_v41 }
  0x97   : > { %576 = vmatmul.mubr.f32.gmra.mrb[14].mxu1 %v213_v41  ;;  %420 = vmatprep.mubr.f32.mxu0 %v1076_v0 }
  0x98   : > { %581 = vmatprep.mubr.f32.mxu1 %v1076_v0 }
  0x9a   : > { %421 = vmatmul.mubr.f32.gmra.mrb[16].mxu0 %v214_v42 }
  0x9b   : > { %582 = vmatmul.mubr.f32.gmra.mrb[16].mxu1 %v214_v42  ;;  %426 = vmatprep.mubr.f32.mxu0 %v1076_v0 }
  0x9c   : > { %587 = vmatprep.mubr.f32.mxu1 %v1076_v0 }
  0x9e   : > { %427 = vmatmul.mubr.f32.gmra.mrb[18].mxu0 %v215_v43 }
  0x9f   : > { %588 = vmatmul.mubr.f32.gmra.mrb[18].mxu1 %v215_v43  ;;  %432 = vmatprep.mubr.f32.mxu0 %v1076_v0 }
  0xa0   : > { %593 = vmatprep.mubr.f32.mxu1 %v1076_v0 }
  0xa2   : > { %433 = vmatmul.mubr.f32.gmra.mrb[20].mxu0 %v216_v44 }
  0xa3   : > { %594 = vmatmul.mubr.f32.gmra.mrb[20].mxu1 %v216_v44  ;;  %438 = vmatprep.mubr.f32.mxu0 %v1076_v0 }
  0xa4   : > { %599 = vmatprep.mubr.f32.mxu1 %v1076_v0 }
  0xa6   : > { %439 = vmatmul.mubr.f32.gmra.mrb[22].mxu0 %v217_v45 }
  0xa7   : > { %600 = vmatmul.mubr.f32.gmra.mrb[22].mxu1 %v217_v45  ;;  %444 = vmatprep.mubr.f32.mxu0 %v1076_v0 }
  0xa8   : > { %605 = vmatprep.mubr.f32.mxu1 %v1076_v0 }
  0xaa   : > { %445 = vmatmul.mubr.f32.gmra.mrb[24].mxu0 %v218_v46 }
  0xab   : > { %606 = vmatmul.mubr.f32.gmra.mrb[24].mxu1 %v218_v46  ;;  %450 = vmatprep.mubr.f32.mxu0 %v1076_v0 }
  0xac   : > { %611 = vmatprep.mubr.f32.mxu1 %v1076_v0 }
  0xae   : > { %451 = vmatmul.mubr.f32.gmra.mrb[26].mxu0 %v219_v47 }
  0xaf   : > { %612 = vmatmul.mubr.f32.gmra.mrb[26].mxu1 %v219_v47  ;;  %456 = vmatprep.mubr.f32.mxu0 %v1076_v0 }
  0xb0   : > { %617 = vmatprep.mubr.f32.mxu1 %v1076_v0 }
  0xb2   : > { %457 = vmatmul.mubr.f32.gmra.mrb[28].mxu0 %v220_v48 }
  0xb3   : > { %618 = vmatmul.mubr.f32.gmra.mrb[28].mxu1 %v220_v48  ;;  %462 = vmatprep.mubr.f32.mxu0 %v1076_v0 }
  0xb4   : > { %623 = vmatprep.mubr.f32.mxu1 %v1076_v0  ;;  %v1311_v0 = vrot.slane %v286_v53, %v302_v56 }
  0xb6   : > { %463 = vmatmul.mubr.f32.gmra.mrb[30].mxu0 %v221_v49 }
  0xb7   : > { %624 = vmatmul.mubr.f32.gmra.mrb[30].mxu1 %v221_v49 }
 0x14d   : > { %v374_v60 = vpop.f32.mrb[0].mxu0 }
 0x14e   : > { %v375_v61 = vadd.f32 %v374_v60, %v1305_v57  ;;  %v535_v62 = vpop.f32.mrb[0].mxu1  ;;  %v376_v63 = vpop.f32.mrb[1].mxu0 }
 0x14f   : > { %v536_v1 = vadd.f32 %v535_v62, %v1307_v58  ;;  %v377_v2 = vadd.f32 %v376_v63, %v1309_v59  ;;  %v537_v3 = vpop.f32.mrb[1].mxu1 }
 0x150   : > { %630 = vst [vmem:[%s1316_s25] sm:$0xff] %v375_v61  ;;  %v538_v4 = vadd.f32 %v537_v3, %v1311_v0 }
 0x151   : > { %632 = vst [vmem:[%s1316_s25 + $0x10] sm:$0xff] %v536_v1  ;;  %631 = vst [vmem:[%s1316_s25 + $0x8] sm:$0xff] %v377_v2  ;;  %v380_v5 = vpop.f32.mrb[2].mxu0 }
 0x152   : > { %633 = vst [vmem:[%s1316_s25 + $0x18] sm:$0xff] %v538_v4  ;;  %v381_v6 = vadd.f32 %v380_v5, %v1305_v57  ;;  %v541_v7 = vpop.f32.mrb[2].mxu1  ;;  %v382_v8 = vpop.f32.mrb[3].mxu0 }
 0x153   : > { %v542_v9 = vadd.f32 %v541_v7, %v1307_v58  ;;  %v383_v10 = vadd.f32 %v382_v8, %v1309_v59  ;;  %v543_v11 = vpop.f32.mrb[3].mxu1 }
 0x154   : > { %634 = vst [vmem:[%s1316_s25 + $0x20] sm:$0xff] %v381_v6  ;;  %v544_v12 = vadd.f32 %v543_v11, %v1311_v0 }
 0x155   : > { %636 = vst [vmem:[%s1316_s25 + $0x30] sm:$0xff] %v542_v9  ;;  %635 = vst [vmem:[%s1316_s25 + $0x28] sm:$0xff] %v383_v10  ;;  %v386_v13 = vpop.f32.mrb[4].mxu0 }
 0x156   : > { %637 = vst [vmem:[%s1316_s25 + $0x38] sm:$0xff] %v544_v12  ;;  %v387_v14 = vadd.f32 %v386_v13, %v1305_v57  ;;  %v547_v15 = vpop.f32.mrb[4].mxu1  ;;  %v388_v16 = vpop.f32.mrb[5].mxu0 }
 0x157   : > { %v548_v17 = vadd.f32 %v547_v15, %v1307_v58  ;;  %v389_v18 = vadd.f32 %v388_v16, %v1309_v59  ;;  %v549_v19 = vpop.f32.mrb[5].mxu1 }
 0x158   : > { %638 = vst [vmem:[%s1316_s25 + $0x40] sm:$0xff] %v387_v14  ;;  %v550_v20 = vadd.f32 %v549_v19, %v1311_v0 }
 0x159   : > { %640 = vst [vmem:[%s1316_s25 + $0x50] sm:$0xff] %v548_v17  ;;  %639 = vst [vmem:[%s1316_s25 + $0x48] sm:$0xff] %v389_v18  ;;  %v392_v21 = vpop.f32.mrb[6].mxu0 }
 0x15a   : > { %641 = vst [vmem:[%s1316_s25 + $0x58] sm:$0xff] %v550_v20  ;;  %v393_v22 = vadd.f32 %v392_v21, %v1305_v57  ;;  %v553_v23 = vpop.f32.mrb[6].mxu1  ;;  %v394_v24 = vpop.f32.mrb[7].mxu0 }
 0x15b   : > { %v554_v25 = vadd.f32 %v553_v23, %v1307_v58  ;;  %v395_v26 = vadd.f32 %v394_v24, %v1309_v59  ;;  %v555_v27 = vpop.f32.mrb[7].mxu1 }
 0x15c   : > { %642 = vst [vmem:[%s1316_s25 + $0x60] sm:$0xff] %v393_v22  ;;  %v556_v28 = vadd.f32 %v555_v27, %v1311_v0 }
 0x15d   : > { %644 = vst [vmem:[%s1316_s25 + $0x70] sm:$0xff] %v554_v25  ;;  %643 = vst [vmem:[%s1316_s25 + $0x68] sm:$0xff] %v395_v26  ;;  %v398_v29 = vpop.f32.mrb[8].mxu0 }
 0x15e   : > { %645 = vst [vmem:[%s1316_s25 + $0x78] sm:$0xff] %v556_v28  ;;  %v399_v30 = vadd.f32 %v398_v29, %v1305_v57  ;;  %v559_v31 = vpop.f32.mrb[8].mxu1  ;;  %v400_v32 = vpop.f32.mrb[9].mxu0 }
 0x15f   : > { %v560_v33 = vadd.f32 %v559_v31, %v1307_v58  ;;  %v401_v34 = vadd.f32 %v400_v32, %v1309_v59  ;;  %v561_v35 = vpop.f32.mrb[9].mxu1 }
 0x160   : > { %646 = vst [vmem:[%s1316_s25 + $0x80] sm:$0xff] %v399_v30  ;;  %v562_v36 = vadd.f32 %v561_v35, %v1311_v0 }
 0x161   : > { %648 = vst [vmem:[%s1316_s25 + $0x90] sm:$0xff] %v560_v33  ;;  %647 = vst [vmem:[%s1316_s25 + $0x88] sm:$0xff] %v401_v34  ;;  %v404_v37 = vpop.f32.mrb[10].mxu0 }
 0x162   : > { %649 = vst [vmem:[%s1316_s25 + $0x98] sm:$0xff] %v562_v36  ;;  %v405_v38 = vadd.f32 %v404_v37, %v1305_v57  ;;  %v565_v39 = vpop.f32.mrb[10].mxu1  ;;  %v406_v40 = vpop.f32.mrb[11].mxu0 }
 0x163   : > { %v566_v41 = vadd.f32 %v565_v39, %v1307_v58  ;;  %v407_v42 = vadd.f32 %v406_v40, %v1309_v59  ;;  %v567_v43 = vpop.f32.mrb[11].mxu1 }
 0x164   : > { %650 = vst [vmem:[%s1316_s25 + $0xa0] sm:$0xff] %v405_v38  ;;  %v568_v44 = vadd.f32 %v567_v43, %v1311_v0 }
 0x165   : > { %652 = vst [vmem:[%s1316_s25 + $0xb0] sm:$0xff] %v566_v41  ;;  %651 = vst [vmem:[%s1316_s25 + $0xa8] sm:$0xff] %v407_v42  ;;  %v410_v45 = vpop.f32.mrb[12].mxu0 }
 0x166   : > { %653 = vst [vmem:[%s1316_s25 + $0xb8] sm:$0xff] %v568_v44  ;;  %v411_v46 = vadd.f32 %v410_v45, %v1305_v57  ;;  %v571_v47 = vpop.f32.mrb[12].mxu1  ;;  %v412_v48 = vpop.f32.mrb[13].mxu0 }
 0x167   : > { %v572_v49 = vadd.f32 %v571_v47, %v1307_v58  ;;  %v413_v50 = vadd.f32 %v412_v48, %v1309_v59  ;;  %v573_v51 = vpop.f32.mrb[13].mxu1 }
 0x168   : > { %654 = vst [vmem:[%s1316_s25 + $0xc0] sm:$0xff] %v411_v46  ;;  %v574_v52 = vadd.f32 %v573_v51, %v1311_v0 }
 0x169   : > { %656 = vst [vmem:[%s1316_s25 + $0xd0] sm:$0xff] %v572_v49  ;;  %655 = vst [vmem:[%s1316_s25 + $0xc8] sm:$0xff] %v413_v50  ;;  %v416_v53 = vpop.f32.mrb[14].mxu0 }
 0x16a   : > { %657 = vst [vmem:[%s1316_s25 + $0xd8] sm:$0xff] %v574_v52  ;;  %v417_v54 = vadd.f32 %v416_v53, %v1305_v57  ;;  %v577_v55 = vpop.f32.mrb[14].mxu1  ;;  %v418_v56 = vpop.f32.mrb[15].mxu0 }
 0x16b   : > { %v578_v60 = vadd.f32 %v577_v55, %v1307_v58  ;;  %v419_v61 = vadd.f32 %v418_v56, %v1309_v59  ;;  %v579_v62 = vpop.f32.mrb[15].mxu1 }
 0x16c   : > { %658 = vst [vmem:[%s1316_s25 + $0xe0] sm:$0xff] %v417_v54  ;;  %v580_v63 = vadd.f32 %v579_v62, %v1311_v0 }
 0x16d   : > { %660 = vst [vmem:[%s1316_s25 + $0xf0] sm:$0xff] %v578_v60  ;;  %659 = vst [vmem:[%s1316_s25 + $0xe8] sm:$0xff] %v419_v61  ;;  %v422_v1 = vpop.f32.mrb[16].mxu0 }
 0x16e   : > { %661 = vst [vmem:[%s1316_s25 + $0xf8] sm:$0xff] %v580_v63  ;;  %v423_v2 = vadd.f32 %v422_v1, %v1305_v57  ;;  %v583_v3 = vpop.f32.mrb[16].mxu1  ;;  %v424_v4 = vpop.f32.mrb[17].mxu0 }
 0x16f   : > { %v584_v5 = vadd.f32 %v583_v3, %v1307_v58  ;;  %v425_v6 = vadd.f32 %v424_v4, %v1309_v59  ;;  %v585_v7 = vpop.f32.mrb[17].mxu1 }
 0x170   : > { %662 = vst [vmem:[%s1316_s25 + $0x100] sm:$0xff] %v423_v2  ;;  %v586_v8 = vadd.f32 %v585_v7, %v1311_v0 }
 0x171   : > { %664 = vst [vmem:[%s1316_s25 + $0x110] sm:$0xff] %v584_v5  ;;  %663 = vst [vmem:[%s1316_s25 + $0x108] sm:$0xff] %v425_v6  ;;  %v428_v9 = vpop.f32.mrb[18].mxu0 }
 0x172   : > { %665 = vst [vmem:[%s1316_s25 + $0x118] sm:$0xff] %v586_v8  ;;  %v429_v10 = vadd.f32 %v428_v9, %v1305_v57  ;;  %v589_v11 = vpop.f32.mrb[18].mxu1  ;;  %v430_v12 = vpop.f32.mrb[19].mxu0 }
 0x173   : > { %v590_v13 = vadd.f32 %v589_v11, %v1307_v58  ;;  %v431_v14 = vadd.f32 %v430_v12, %v1309_v59  ;;  %v591_v15 = vpop.f32.mrb[19].mxu1 }
 0x174   : > { %666 = vst [vmem:[%s1316_s25 + $0x120] sm:$0xff] %v429_v10  ;;  %v592_v16 = vadd.f32 %v591_v15, %v1311_v0 }
 0x175   : > { %668 = vst [vmem:[%s1316_s25 + $0x130] sm:$0xff] %v590_v13  ;;  %667 = vst [vmem:[%s1316_s25 + $0x128] sm:$0xff] %v431_v14  ;;  %v434_v17 = vpop.f32.mrb[20].mxu0 }
 0x176   : > { %669 = vst [vmem:[%s1316_s25 + $0x138] sm:$0xff] %v592_v16  ;;  %v435_v18 = vadd.f32 %v434_v17, %v1305_v57  ;;  %v595_v19 = vpop.f32.mrb[20].mxu1  ;;  %v436_v20 = vpop.f32.mrb[21].mxu0 }
 0x177   : > { %v596_v21 = vadd.f32 %v595_v19, %v1307_v58  ;;  %v437_v22 = vadd.f32 %v436_v20, %v1309_v59  ;;  %v597_v23 = vpop.f32.mrb[21].mxu1 }
 0x178   : > { %670 = vst [vmem:[%s1316_s25 + $0x140] sm:$0xff] %v435_v18  ;;  %v598_v24 = vadd.f32 %v597_v23, %v1311_v0 }
 0x179   : > { %672 = vst [vmem:[%s1316_s25 + $0x150] sm:$0xff] %v596_v21  ;;  %671 = vst [vmem:[%s1316_s25 + $0x148] sm:$0xff] %v437_v22  ;;  %v440_v25 = vpop.f32.mrb[22].mxu0 }
 0x17a   : > { %673 = vst [vmem:[%s1316_s25 + $0x158] sm:$0xff] %v598_v24  ;;  %v441_v26 = vadd.f32 %v440_v25, %v1305_v57  ;;  %v601_v27 = vpop.f32.mrb[22].mxu1  ;;  %v442_v28 = vpop.f32.mrb[23].mxu0 }
 0x17b   : > { %v602_v29 = vadd.f32 %v601_v27, %v1307_v58  ;;  %v443_v30 = vadd.f32 %v442_v28, %v1309_v59  ;;  %v603_v31 = vpop.f32.mrb[23].mxu1 }
 0x17c   : > { %674 = vst [vmem:[%s1316_s25 + $0x160] sm:$0xff] %v441_v26  ;;  %v604_v32 = vadd.f32 %v603_v31, %v1311_v0 }
 0x17d   : > { %676 = vst [vmem:[%s1316_s25 + $0x170] sm:$0xff] %v602_v29  ;;  %675 = vst [vmem:[%s1316_s25 + $0x168] sm:$0xff] %v443_v30  ;;  %v446_v33 = vpop.f32.mrb[24].mxu0 }
 0x17e   : > { %677 = vst [vmem:[%s1316_s25 + $0x178] sm:$0xff] %v604_v32  ;;  %v447_v34 = vadd.f32 %v446_v33, %v1305_v57  ;;  %v607_v35 = vpop.f32.mrb[24].mxu1  ;;  %v448_v36 = vpop.f32.mrb[25].mxu0 }
 0x17f   : > { %v608_v37 = vadd.f32 %v607_v35, %v1307_v58  ;;  %v449_v38 = vadd.f32 %v448_v36, %v1309_v59  ;;  %v609_v39 = vpop.f32.mrb[25].mxu1 }
 0x180   : > { %678 = vst [vmem:[%s1316_s25 + $0x180] sm:$0xff] %v447_v34  ;;  %v610_v40 = vadd.f32 %v609_v39, %v1311_v0 }
 0x181   : > { %680 = vst [vmem:[%s1316_s25 + $0x190] sm:$0xff] %v608_v37  ;;  %679 = vst [vmem:[%s1316_s25 + $0x188] sm:$0xff] %v449_v38  ;;  %v452_v41 = vpop.f32.mrb[26].mxu0 }
 0x182   : > { %681 = vst [vmem:[%s1316_s25 + $0x198] sm:$0xff] %v610_v40  ;;  %v453_v42 = vadd.f32 %v452_v41, %v1305_v57  ;;  %v613_v43 = vpop.f32.mrb[26].mxu1  ;;  %v454_v44 = vpop.f32.mrb[27].mxu0 }
 0x183   : > { %v614_v45 = vadd.f32 %v613_v43, %v1307_v58  ;;  %v455_v46 = vadd.f32 %v454_v44, %v1309_v59  ;;  %v615_v47 = vpop.f32.mrb[27].mxu1 }
 0x184   : > { %682 = vst [vmem:[%s1316_s25 + $0x1a0] sm:$0xff] %v453_v42  ;;  %v616_v48 = vadd.f32 %v615_v47, %v1311_v0 }
 0x185   : > { %684 = vst [vmem:[%s1316_s25 + $0x1b0] sm:$0xff] %v614_v45  ;;  %683 = vst [vmem:[%s1316_s25 + $0x1a8] sm:$0xff] %v455_v46  ;;  %v458_v49 = vpop.f32.mrb[28].mxu0 }
 0x186   : > { %685 = vst [vmem:[%s1316_s25 + $0x1b8] sm:$0xff] %v616_v48  ;;  %v459_v50 = vadd.f32 %v458_v49, %v1305_v57  ;;  %v619_v51 = vpop.f32.mrb[28].mxu1  ;;  %v460_v52 = vpop.f32.mrb[29].mxu0 }
 0x187   : > { %v620_v53 = vadd.f32 %v619_v51, %v1307_v58  ;;  %v461_v54 = vadd.f32 %v460_v52, %v1309_v59  ;;  %v621_v55 = vpop.f32.mrb[29].mxu1 }
 0x188   : > { %686 = vst [vmem:[%s1316_s25 + $0x1c0] sm:$0xff] %v459_v50  ;;  %v622_v56 = vadd.f32 %v621_v55, %v1311_v0 }
 0x189   : > { %688 = vst [vmem:[%s1316_s25 + $0x1d0] sm:$0xff] %v620_v53  ;;  %687 = vst [vmem:[%s1316_s25 + $0x1c8] sm:$0xff] %v461_v54  ;;  %v464_v60 = vpop.f32.mrb[30].mxu0 }
 0x18a   : > { %689 = vst [vmem:[%s1316_s25 + $0x1d8] sm:$0xff] %v622_v56  ;;  %v465_v61 = vadd.f32 %v464_v60, %v1305_v57  ;;  %v625_v62 = vpop.f32.mrb[30].mxu1  ;;  %v466_v63 = vpop.f32.mrb[31].mxu0 }
 0x18b   : > { %v626_v1 = vadd.f32 %v625_v62, %v1307_v58  ;;  %v467_v2 = vadd.f32 %v466_v63, %v1309_v59  ;;  %v627_v3 = vpop.f32.mrb[31].mxu1 }
 0x18c   : > { %690 = vst [vmem:[%s1316_s25 + $0x1e0] sm:$0xff] %v465_v61  ;;  %v628_v57 = vadd.f32 %v627_v3, %v1311_v0 }
 0x18d   : > { %692 = vst [vmem:[%s1316_s25 + $0x1f0] sm:$0xff] %v626_v1  ;;  %691 = vst [vmem:[%s1316_s25 + $0x1e8] sm:$0xff] %v467_v2 }
 0x18e   : > { %693 = vst [vmem:[%s1316_s25 + $0x1f8] sm:$0xff] %v628_v57 }
 0x18f   : > { %1011 = shalt.err (!%p1008_p7)
}
 0x190   : > { %s1012_s22 = scalar_lea.hbm %s1443_s11, 8192  ;;  %s1016_s9 = scalar_lea.hbm %s1497_s3, 16384 }
 0x191   : > { %p1013_p9 = scmp.ne.s32.totalorder %s1443_s11, %s1012_s22  ;;  %p1017_p5 = scmp.lt.u32.totalorder %s1443_s11, %s1497_s3 }
 0x192   : > { %p1018_p11 = scmp.lt.u32.totalorder %s1016_s9, %s1012_s22  ;;  %p1020_p4 = scmp.lt.u32.totalorder %s1012_s22, %s1443_s11 }
 0x193   : > { %p1014_p2 = pnand %p1013_p9, %p1191_p12 }
 0x194   : > { %p1019_p1 = por %p1018_p11, %p1017_p5 }
 0x195   : > { %p1015_p0 = pneg %p1014_p2 }
 0x196   : > { %p1021_p6 = por %p1020_p4, %p1019_p1 }
 0x198   : > { %p1022_p8 = pnand %p1021_p6, %p1015_p0 }
 0x19a   : > { %1025 = shalt.err (!%p1022_p8)
}
 0x19b   : > { %s1078_s4 = smov 512   ;;  %s1079_s25 = smov 32  }
 0x19c   : > { %882 = dma.vmem_to_hbm [thread:$0]  (%p1191_p12), %s1445_s5, 8192, %s1443_s11, %s695_s27, %s1078_s4, %s1078_s4, %s1079_s25  }
 0x19d PF: > { %s724_s26 = sand.u32 1, %s1056_s12   ;;  %p1512_p10 = scmp.ne.s32.totalorder %s1502_s19, 0 }
 0x19e   : > { %p1513_p13 = scmp.ge.s32.totalorder %s1068_s15, 2  ;;  %s725_s16 = scalar_lea.sflag [#allocation4], %s724_s26 }
 0x1a0   : > { %p893_p3 = pnand %p1513_p13, %p1512_p10 }
 0x1a2   : > { %1051 = dma.done.wait (!%p893_p3), %s725_s16, 8192  }
 0x1a3   : > { %1053 = vsyncadd (!%p893_p3), %s725_s16, 4294959104  ;;  %p17_p7 = scmp.ge.s32.totalorder %s1156_s24, 4   ;;  %s1514_s12 = smov %s1060_s13 }
 0x1a4   : > { %s1515_s13 = smov %s1064_s14  ;;  %s1516_s14 = smov %s1187_s17 }
 0x1a5   : > { %s1517_s15 = smov %s1156_s24  ;;  %19 = sbr.rel (!%p17_p7) target bundleno = 6 (0x6), region = 81 }
 0x1ac   :  { %730 = vsyncpa [#allocation3], 1 }
 0x1ad   :  { %732 = vsyncpa [#allocation3 + $0x1], 1 }
 0x1ae   :  { %733 = vsyncpa [#allocation6], 1 }
 0x1af   :  { %734 = vsyncpa [#allocation4], 1 }
 0x1b0   :  { %736 = vsyncpa [#allocation4 + $0x1], 1 }

</bundles_post_ra>
